<compile_context>
chip_gen: v6e
topology: v6e:2x2x1
jax: 0.10.0
libtpu: 0.0.40
codegen_flags: <defaults>
</compile_context>

<pallas_src>
import functools

import jax
import jax.numpy as jnp
from jax.experimental import pallas as pl
from jax.experimental.pallas import tpu as pltpu


def _round_up(n, m):
    return ((n + m - 1) // m) * m


def _record_encoder_kernel(x_ref, m_ref, out_ref, *, low, high, levels):
    x = x_ref[...]                       # (TB, S) float32 raw feature values
    TB, S = x.shape
    Kp = m_ref.shape[0]                  # (Kp, TD) fused bind table (zero-padded K)

    # --- ScatterCode(levels, D, low, high): quantize value -> level index ---
    scale = float(levels - 1) / float(high - low)
    idx = jnp.round((x - float(low)) * scale)
    idx = jnp.clip(idx, 0.0, float(levels - 1)).astype(jnp.int32)      # (TB, S)

    # --- Lane-dense boolean one-hot over the flattened (feature, level) axis ---
    # Column S*levels is the folded bias row of M: set it for every batch row.
    kiota = jax.lax.broadcasted_iota(jnp.int32, (TB, Kp), 1)           # (TB, Kp)
    onehot = kiota == (S * levels)                                     # bias column
    for s in range(S):                   # S is tiny (number of record fields); unrolled
        tgt = idx[:, s:s + 1] + s * levels                             # (TB, 1) int32
        onehot = jnp.logical_or(onehot, kiota == tgt)

    # --- Whole encode (bind + multiset count + bias + threshold) as one GEMM ---
    if jnp.issubdtype(m_ref.dtype, jnp.integer):
        acc_dtype = jnp.int32            # v5e/v6e int8 MXU path
    else:
        acc_dtype = jnp.float32          # bf16 (portable / v7x) path
    counts = jnp.dot(onehot.astype(m_ref.dtype), m_ref[...],
                     preferred_element_type=acc_dtype)                 # (TB, TD)

    # Bias row already folds sum_s(position), the tie-break vector (even S) and the
    # majority threshold, so the decision is just "> 0".
    out_ref[...] = (counts > 0).astype(out_ref.dtype)


def build_encoder_tables(level_hv, position_hv, tie_hv, *, table_dtype=jnp.bfloat16):
    """One-time precompute of the fused bind table (bias folded in), outside the hot path.

    Returned table M has K = S*levels + 1 meaningful rows (last row = bias), zero
    padded up to a multiple of 128.  Values are in {-1, 0, 1} plus a small-integer
    bias row, so bf16 / int8 / fp8 representations are all exact.
    """
    S, D = position_hv.shape
    L = level_hv.shape[0]
    pos = position_hv.astype(jnp.float32)                # (S, D) {0,1}
    lvl = level_hv.astype(jnp.float32)                   # (L, D) {0,1}
    # M[s*L + l, d] = lvl[l,d] * (1 - 2*pos[s,d])  in {-1, 0, 1}
    m = (lvl[None, :, :] * (1.0 - 2.0 * pos[:, None, :])).reshape(S * L, D)

    bias = jnp.sum(pos, axis=0, keepdims=True)           # (1, D) = sum_s pos
    n = S
    if S % 2 == 0:
        # BSC multibundle adds a tie-break hypervector when bundling an even count.
        bias = bias + tie_hv.astype(jnp.float32)
        n = S + 1
    bias = bias - float(n // 2)                          # fold the majority threshold

    m = jnp.concatenate([m, bias], axis=0)               # bias row lives at K index S*L
    k = S * L + 1
    kp = max(128, _round_up(k, 128))                     # pad K to a lane multiple
    m = jnp.pad(m, ((0, kp - k), (0, 0)))
    return m.astype(table_dtype)


def record_encoder(x, m_table, *, levels, low, high, tb=None, td=None):
    """x: (B, size) float32. Returns (B, D) uint8 BSC hypervectors."""
    if high <= low:
        raise ValueError("RecordEncoder requires high > low")
    B, S = x.shape
    Kp, D = m_table.shape

    # Batch tile: multiple of 32 (packed uint8 vst), capped so large batches produce
    # multiple 'parallel' grid steps (shareable across v7x's two TensorCores) while
    # single-TC chips still get big tiles that amortize the ~0.35us/step overhead.
    if tb is None:
        tb = max(32, min(512, _round_up(B, 32)))
    tb = _round_up(tb, 32)

    # D tile: only tile the hyperdimension when it is large (bounds VMEM independent
    # of D); keep it a multiple of 128 so loads/stores stay lane-dense.
    if td is None:
        td = D
        if D > 1024:
            for cand in (512, 256, 128):
                if D % cand == 0:
                    td = cand
                    break
    assert D % td == 0, (D, td)

    # Remainder batches: pad up to the tile, slice the result (no divisibility assert).
    Bp = _round_up(B, tb)
    if Bp != B:
        x = jnp.pad(x, ((0, Bp - B), (0, 0)))

    kern = functools.partial(_record_encoder_kernel, low=low, high=high, levels=levels)
    out = pl.pallas_call(
        kern,
        out_shape=jax.ShapeDtypeStruct((Bp, D), jnp.uint8),
        grid=(Bp // tb, D // td),
        in_specs=[
            pl.BlockSpec((tb, S), lambda i, j: (i, 0)),   # x tile over batch
            # Fused bind table (bias folded in); constant over the batch axis.
            # TODO(synk): on v7x add pipeline_mode=pl.Buffered(1) here to single-buffer
            # the constant block and halve its resident VMEM.
            pl.BlockSpec((Kp, td), lambda i, j: (0, j)),
        ],
        out_specs=pl.BlockSpec((tb, td), lambda i, j: (i, j)),
        compiler_params=pltpu.CompilerParams(
            dimension_semantics=("parallel", "parallel")),
    )(x, m_table)
    return out[:B] if Bp != B else out


def init_params(key, size, out_features, levels):
    """Deterministic synthetic parameters matching the module's __init__ shapes."""
    k_pos, k_base, k_flip, k_tie = jax.random.split(key, 4)
    # embeddings.Random(size, D, vsa='BSC'): iid Bernoulli(0.5) bits.
    position = jax.random.bernoulli(k_pos, 0.5, (size, out_features)).astype(jnp.uint8)
    # ScatterCode level table: random base vector, each consecutive level flips a
    # random subset of bits (similarity decays with level distance).
    base = jax.random.bernoulli(k_base, 0.5, (out_features,)).astype(jnp.int32)
    flip = jax.random.bernoulli(k_flip, 1.0 / levels, (levels, out_features)).astype(jnp.int32)
    flip = flip.at[0].set(0)
    level = (jnp.cumsum(flip, axis=0) % 2).astype(jnp.int32)
    level = jnp.bitwise_xor(level, base[None, :]).astype(jnp.uint8)
    # TODO(synk): torchhd draws a *fresh* random tie-break vector inside BSC
    # multibundle for even counts; we use a fixed deterministic one for reproducibility.
    tie = jax.random.bernoulli(k_tie, 0.5, (1, out_features)).astype(jnp.uint8)
    return position, level, tie


def reference(x, level_hv, position_hv, tie_hv, *, low, high):
    """Pure-JAX reference of the same forward pass (explicit XOR + majority)."""
    L = level_hv.shape[0]
    S = x.shape[1]
    idx = jnp.clip(jnp.round((x - low) / (high - low) * (L - 1)), 0, L - 1).astype(jnp.int32)
    val = level_hv[idx].astype(jnp.int32)                           # (B, S, D)
    bound = jnp.bitwise_xor(position_hv.astype(jnp.int32)[None], val)
    counts = bound.sum(axis=1)                                      # (B, D)
    n = S
    if S % 2 == 0:
        counts = counts + tie_hv.astype(jnp.int32)
        n += 1
    return (counts > n // 2).astype(jnp.uint8)


if __name__ == "__main__":
    # Small shapes consistent with the iris example: 4 features per record.
    batch = 16
    size = 4            # number of record fields (iris features)
    out_features = 256  # hyperdimension D
    levels = 10
    low, high = 0.0, 8.0

    key = jax.random.PRNGKey(0)
    k_x, k_params = jax.random.split(key)
    x = jax.random.uniform(k_x, (batch, size), minval=low, maxval=high, dtype=jnp.float32)
    position_hv, level_hv, tie_hv = init_params(k_params, size, out_features, levels)

    # One-time precompute of the fused bind table (bias folded in), outside the hot
    # path.  bf16 is the portable/v7x choice; on v5e/v6e pass table_dtype=jnp.int8
    # for the native int8 MXU path (exact arithmetic either way).
    m_table = build_encoder_tables(level_hv, position_hv, tie_hv,
                                   table_dtype=jnp.bfloat16)

    out = record_encoder(x, m_table, levels=levels, low=low, high=high)
    out = jax.block_until_ready(out)

    ref = reference(x, level_hv, position_hv, tie_hv, low=low, high=high)
    assert out.shape == (batch, out_features), out.shape
    assert out.dtype == jnp.uint8, out.dtype
    assert bool(jnp.all(out == ref)), "kernel output mismatch vs pure-JAX reference"
    print("KERNEL_OK")
</pallas_src>

<mosaic_0001>
module attributes {stable_mosaic.version = 11 : i64} {
  func.func @_record_encoder_kernel(%arg0: i32, %arg1: i32, %arg2: memref<32x4xf32, #tpu.memory_space<vmem>>, %arg3: memref<128x256xbf16, #tpu.memory_space<vmem>>, %arg4: memref<32x256xi8, #tpu.memory_space<vmem>>) attributes {dimension_semantics = [#tpu.dimension_semantics<parallel>, #tpu.dimension_semantics<parallel>], iteration_bounds = array<i64: 1, 1>, scalar_prefetch = 0 : i64, scratch_operands = 0 : i64, tpu.core_type = #tpu.core_type<tc>, window_params = [{transform_indices = @transform_0, window_bounds = array<i64: 32, 4>}, {transform_indices = @transform_1, window_bounds = array<i64: 128, 256>}, {transform_indices = @transform_2, window_bounds = array<i64: 32, 256>}]} {
    %c0 = arith.constant 0 : index
    %c0_0 = arith.constant 0 : index
    %0 = vector.load %arg2[%c0, %c0_0] : memref<32x4xf32, #tpu.memory_space<vmem>>, vector<32x4xf32>
    %cst = arith.constant 0.000000e+00 : f32
    %1 = vector.broadcast %cst : f32 to vector<32x4xf32>
    %2 = arith.subf %0, %1 : vector<32x4xf32>
    %cst_1 = arith.constant 1.125000e+00 : f32
    %3 = vector.broadcast %cst_1 : f32 to vector<32x4xf32>
    %4 = arith.mulf %2, %3 : vector<32x4xf32>
    %5 = math.roundeven %4 : vector<32x4xf32>
    %cst_2 = arith.constant 0.000000e+00 : f32
    %cst_3 = arith.constant 9.000000e+00 : f32
    %6 = vector.broadcast %cst_2 : f32 to vector<32x4xf32>
    %7 = arith.maximumf %6, %5 : vector<32x4xf32>
    %8 = vector.broadcast %cst_3 : f32 to vector<32x4xf32>
    %9 = arith.minimumf %8, %7 : vector<32x4xf32>
    %10 = arith.fptosi %9 : vector<32x4xf32> to vector<32x4xi32>
    %11 = tpu.iota {dimensions = array<i32: 1>} : vector<32x128xi32>
    %c40_i32 = arith.constant 40 : i32
    %12 = vector.broadcast %c40_i32 : i32 to vector<32x128xi32>
    %13 = arith.cmpi eq, %11, %12 : vector<32x128xi32>
    %14 = vector.extract_strided_slice %10 {offsets = [0, 0], sizes = [32, 1], strides = [1, 1]} : vector<32x4xi32> to vector<32x1xi32>
    %c0_i32 = arith.constant 0 : i32
    %15 = vector.broadcast %c0_i32 : i32 to vector<32x1xi32>
    %16 = arith.addi %14, %15 : vector<32x1xi32>
    %17 = vector.broadcast %16 : vector<32x1xi32> to vector<32x128xi32>
    %18 = arith.cmpi eq, %11, %17 : vector<32x128xi32>
    %19 = arith.ori %13, %18 : vector<32x128xi1>
    %20 = vector.extract_strided_slice %10 {offsets = [0, 1], sizes = [32, 1], strides = [1, 1]} : vector<32x4xi32> to vector<32x1xi32>
    %c10_i32 = arith.constant 10 : i32
    %21 = vector.broadcast %c10_i32 : i32 to vector<32x1xi32>
    %22 = arith.addi %20, %21 : vector<32x1xi32>
    %23 = vector.broadcast %22 : vector<32x1xi32> to vector<32x128xi32>
    %24 = arith.cmpi eq, %11, %23 : vector<32x128xi32>
    %25 = arith.ori %19, %24 : vector<32x128xi1>
    %26 = vector.extract_strided_slice %10 {offsets = [0, 2], sizes = [32, 1], strides = [1, 1]} : vector<32x4xi32> to vector<32x1xi32>
    %c20_i32 = arith.constant 20 : i32
    %27 = vector.broadcast %c20_i32 : i32 to vector<32x1xi32>
    %28 = arith.addi %26, %27 : vector<32x1xi32>
    %29 = vector.broadcast %28 : vector<32x1xi32> to vector<32x128xi32>
    %30 = arith.cmpi eq, %11, %29 : vector<32x128xi32>
    %31 = arith.ori %25, %30 : vector<32x128xi1>
    %32 = vector.extract_strided_slice %10 {offsets = [0, 3], sizes = [32, 1], strides = [1, 1]} : vector<32x4xi32> to vector<32x1xi32>
    %c30_i32 = arith.constant 30 : i32
    %33 = vector.broadcast %c30_i32 : i32 to vector<32x1xi32>
    %34 = arith.addi %32, %33 : vector<32x1xi32>
    %35 = vector.broadcast %34 : vector<32x1xi32> to vector<32x128xi32>
    %36 = arith.cmpi eq, %11, %35 : vector<32x128xi32>
    %37 = arith.ori %31, %36 : vector<32x128xi1>
    %38 = arith.extui %37 : vector<32x128xi1> to vector<32x128xi32>
    %39 = arith.sitofp %38 : vector<32x128xi32> to vector<32x128xf32>
    %40 = arith.truncf %39 : vector<32x128xf32> to vector<32x128xbf16>
    %c0_4 = arith.constant 0 : index
    %c0_5 = arith.constant 0 : index
    %41 = vector.load %arg3[%c0_4, %c0_5] : memref<128x256xbf16, #tpu.memory_space<vmem>>, vector<128x256xbf16>
    %cst_6 = arith.constant dense<0.000000e+00> : vector<32x256xf32>
    %42 = tpu.matmul %40, %41, %cst_6 {dimension_numbers = #tpu.dot_dimension_numbers<[1], [0], [0], [1], [0, 0, 1, 1], [], []>} : vector<32x128xbf16>, vector<128x256xbf16>, vector<32x256xf32> -> vector<32x256xf32>
    %cst_7 = arith.constant 0.000000e+00 : f32
    %43 = vector.broadcast %cst_7 : f32 to vector<32x256xf32>
    %44 = arith.cmpf ogt, %42, %43 : vector<32x256xf32>
    %45 = arith.extui %44 : vector<32x256xi1> to vector<32x256xi8>
    %c0_8 = arith.constant 0 : index
    %c0_9 = arith.constant 0 : index
    %46 = vector.load %arg4[%c0_8, %c0_9] : memref<32x256xi8, #tpu.memory_space<vmem>>, vector<32x256xi8>
    tpu.vector_store %arg4[%c0_8, %c0_9], %45 {strides = array<i32>} : memref<32x256xi8, #tpu.memory_space<vmem>>, vector<32x256xi8>,
    return
  }
  func.func @transform_0(%arg0: i32, %arg1: i32) -> (i32, i32) {
    %c0_i32 = arith.constant 0 : i32
    %c0_i32_0 = arith.constant 0 : i32
    return %arg0, %c0_i32 : i32, i32
  }
  func.func @transform_1(%arg0: i32, %arg1: i32) -> (i32, i32) {
    %c0_i32 = arith.constant 0 : i32
    %c0_i32_0 = arith.constant 0 : i32
    return %c0_i32, %arg1 : i32, i32
  }
  func.func @transform_2(%arg0: i32, %arg1: i32) -> (i32, i32) {
    %c0_i32 = arith.constant 0 : i32
    return %arg0, %arg1 : i32, i32
  }
}

</mosaic_0001>

<bundles_post_ra>
// kernel: tpu_custom_call.1
= control target key start
LH: loop header
LB: loop body
LE: loop exit
PB: predicated region body
PF: predicated region fallthrough
CT: control target
= control target key end

     0   :  { %7 = vsyncpa [#allocation3], 0  ;;  %s551_s0 = inlined_call_operand.vmem [shape: f32[32,4], index: 0, kind: input, shape index: {}]   ;;  %s552_s1 = inlined_call_operand.hbm [shape: bf16[128,256], index: 1, kind: input, shape index: {}]   ;;  %s553_s2 = inlined_call_operand.hbm [shape: u8[32,256], index: 2, kind: output, shape index: {}]  }
   0x1   :  { %8 = vsyncpa [#allocation4], 0  ;;  %s485_s9 = smov [#allocation2]  }
   0x2   :  { %s16_s10 = sshll.u32 %s485_s9, 4  ;;  %s17_s10 = int_to_ptr.vmem [resolvable:$true] %s16_s10 }
   0x3   :  { %s449_s11 = scalar_lea.vmem %s17_s10, 2048  ;;  %p454_p1 = scmp.lt.s32.totalorder %s17_s10, %s17_s10 }
   0x4   :  { %p450_p0 = scmp.ne.s32.totalorder %s17_s10, %s449_s11  ;;  %p455_p2 = scmp.lt.s32.totalorder %s449_s11, %s449_s11 }
   0x6   :  { %p456_p3 = por %p455_p2, %p454_p1 }
   0x8   :  { %p457_p4 = pnand %p456_p3, %p450_p0 }
   0xa   :  { %460 = shalt.err (!%p457_p4)
}
   0xb   :  { %s486_s12 = smov 128   ;;  %s487_s13 = smov 8  }
   0xc   :  { %22 = dma.hbm_to_vmem [thread:$0]  %s552_s1, 2048, %s17_s10, [#allocation3], %s486_s12, %s486_s12, %s487_s13  }
   0xd   :  { %481 = dma.done.wait [#allocation3], 2048  }
   0xe   :  { %482 = vsyncadd [#allocation3], 4294965248  ;;  %v488_v0 = vmov 0   ;;  %v31_v1 = vld [vmem:[%s551_s0 + $0x10] sm:$0xff]  ;;  %v29_v2 = vld [vmem:[%s551_s0] sm:$0xff]  ;;  %v489_v28 = vmov 1   ;;  %v53_v60 = vlaneseq }
   0xf   :  { %410 = vset.pattern.permute.xlu1 %v488_v0  ;;  %409 = vset.pattern.permute.xlu0 %v488_v0  ;;  %v32_v3 = vld [vmem:[%s551_s0 + $0x18] sm:$0xff]  ;;  %v35_v4 = vmul.f32 1.125, %v31_v1  ;;  %v33_v5 = vmul.f32 1.125, %v29_v2  ;;  %v30_v7 = vld [vmem:[%s551_s0 + $0x8] sm:$0xff]  ;;  %v490_v38 = vmov 2   ;;  %v491_v43 = vmov 3  }
  0x10   :  { %286 = vmatprep.mubr.bf16.mxu0 %v488_v0  ;;  %296 = vmatprep.mubr.bf16.mxu1 %v488_v0  ;;  %v36_v6 = vmul.f32 1.125, %v32_v3  ;;  %v34_v8 = vmul.f32 1.125, %v30_v7  ;;  %v417_v19 = vld [vmem:[#allocation2 + $0x74] ss:$8 sps:$4 sm:$0xff]   ;;  %v419_v20 = vld [vmem:[#allocation2 + $0x70] ss:$8 sps:$4 sm:$0xff]  }
  0x11   :  { %v346_v9 = vmax.f32 %v35_v4, 0.0  ;;  %v340_v10 = vmax.f32 %v33_v5, 0.0  ;;  %254 = vmatprep.subr.bf16.mxu0 %v417_v19  ;;  %372 = vmatprep.subr.bf16.mxu1 %v417_v19  ;;  %v420_v23 = vld [vmem:[#allocation2 + $0x64] ss:$8 sps:$4 sm:$0xff]   ;;  %v422_v24 = vld [vmem:[#allocation2 + $0x60] ss:$8 sps:$4 sm:$0xff]  }
  0x12   :  { %v349_v11 = vmax.f32 %v36_v6, 0.0  ;;  %v343_v12 = vmax.f32 %v34_v8, 0.0  ;;  %255 = vmatpush1.bf16.msra.mxu0 %v419_v20  ;;  %380 = vmatpush1.bf16.msra.mxu1 %v419_v20  ;;  %v423_v27 = vld [vmem:[#allocation2 + $0x54] ss:$8 sps:$4 sm:$0xff]   ;;  %v425_v29 = vld [vmem:[#allocation2 + $0x50] ss:$8 sps:$4 sm:$0xff]  }
  0x13   :  { %v347_v13 = vmin.f32 %v346_v9, 9.0  ;;  %v341_v14 = vmin.f32 %v340_v10, 9.0  ;;  %256 = vmatprep.subr.bf16.mxu0 %v420_v23  ;;  %373 = vmatprep.subr.bf16.mxu1 %v420_v23  ;;  %v426_v32 = vld [vmem:[#allocation2 + $0x44] ss:$8 sps:$4 sm:$0xff]   ;;  %v428_v33 = vld [vmem:[#allocation2 + $0x40] ss:$8 sps:$4 sm:$0xff]  }
  0x14   :  { %v350_v15 = vmin.f32 %v349_v11, 9.0  ;;  %v344_v16 = vmin.f32 %v343_v12, 9.0  ;;  %v429_v36 = vld [vmem:[#allocation2 + $0x34] ss:$8 sps:$4 sm:$0xff]   ;;  %v431_v37 = vld [vmem:[#allocation2 + $0x30] ss:$8 sps:$4 sm:$0xff]  }
  0x15   :  { %v528_v17 = vcvt.f32.s32 %v347_v13  ;;  %v390_v18 = vcvt.f32.s32 %v341_v14  ;;  %v432_v41 = vld [vmem:[#allocation2 + $0x24] ss:$8 sps:$4 sm:$0xff]   ;;  %v434_v42 = vld [vmem:[#allocation2 + $0x20] ss:$8 sps:$4 sm:$0xff]   ;;  %v435_v46 = vld [vmem:[#allocation2 + $0x14] ss:$8 sps:$4 sm:$0xff]  }
  0x16   :  { %v399_v21 = vcvt.f32.s32 %v350_v15  ;;  %v531_v22 = vcvt.f32.s32 %v344_v16  ;;  %257 = vmatpush1.bf16.msra.mxu0 %v422_v24  ;;  %381 = vmatpush1.bf16.msra.mxu1 %v422_v24  ;;  %v437_v47 = vld [vmem:[#allocation2 + $0x10] ss:$8 sps:$4 sm:$0xff]   ;;  %v438_v49 = vld [vmem:[#allocation2 + $0x4] ss:$8 sps:$4 sm:$0xff]   ;;  %v440_v50 = vld [vmem:[#allocation2] ss:$8 sps:$4 sm:$0xff]  }
  0x17   :  { %63 = vperm.xlu1 %410, %v528_v17   ;;  %57 = vperm.xlu0 %409, %v390_v18   ;;  %v76_v26 = vadd.s32 10, %v390_v18  ;;  %v78_v30 = vadd.s32 10, %v528_v17  ;;  %v100_v34 = vadd.s32 20, %v390_v18  ;;  %v102_v39 = vadd.s32 20, %v528_v17  ;;  %s493_s0 = smov [#allocation5]  }
  0x18   :  { %v77_v25 = vadd.s32 10, %v531_v22  ;;  %v79_v31 = vadd.s32 10, %v399_v21  ;;  %258 = vmatprep.subr.bf16.mxu0 %v423_v27  ;;  %374 = vmatprep.subr.bf16.mxu1 %v423_v27  ;;  %v101_v35 = vadd.s32 20, %v531_v22  ;;  %v124_v40 = vadd.s32 30, %v390_v18  ;;  %s331_s23 = sshll.u32 %s493_s0, 4  ;;  %s332_s23 = int_to_ptr.vmem [resolvable:$true] %s331_s23 }
  0x19   :  { %v103_v44 = vadd.s32 20, %v399_v21  ;;  %v127_v45 = vadd.s32 30, %v399_v21  ;;  %v125_v48 = vadd.s32 30, %v531_v22  ;;  %v126_v51 = vadd.s32 30, %v528_v17  ;;  %s461_s24 = scalar_lea.vmem %s332_s23, 256  ;;  %p466_p6 = scmp.lt.s32.totalorder %s332_s23, %s332_s23 }
  0x1a   :  { %259 = vmatpush1.bf16.msra.mxu0 %v425_v29  ;;  %382 = vmatpush1.bf16.msra.mxu1 %v425_v29  ;;  %v54_v61 = vand.u32 127, %v53_v60  ;;  %v554_v3 = vmov 0  ;;  %v492_v7 = vmov 0.0   ;;  %p462_p5 = scmp.ne.s32.totalorder %s332_s23, %s461_s24  ;;  %p467_p7 = scmp.lt.s32.totalorder %s461_s24, %s461_s24 }
  0x1b   :  { %66 = vperm.xlu1 %410, %v399_v21   ;;  %60 = vperm.xlu0 %409, %v531_v22  }
  0x1c   :  { %260 = vmatprep.subr.bf16.mxu0 %v426_v32  ;;  %375 = vmatprep.subr.bf16.mxu1 %v426_v32  ;;  %vm55_vm2 = vcmp.eq.s32.totalorder %v54_v61, 40  ;;  %p468_p8 = por %p467_p7, %p466_p6 }
  0x1e   :  { %261 = vmatpush1.bf16.msra.mxu0 %v428_v33  ;;  %383 = vmatpush1.bf16.msra.mxu1 %v428_v33  ;;  %p469_p9 = pnand %p468_p8, %p462_p5 }
  0x1f   :  { %412 = vset.pattern.permute.xlu1 %v489_v28  ;;  %411 = vset.pattern.permute.xlu0 %v489_v28 }
  0x20   :  { %84 = vperm.xlu1 %412, %v77_v25   ;;  %81 = vperm.xlu0 %411, %v76_v26  }
  0x21   :  { %262 = vmatprep.subr.bf16.mxu0 %v429_v36  ;;  %376 = vmatprep.subr.bf16.mxu1 %v429_v36 }
  0x22   :  { %263 = vmatpush1.bf16.msra.mxu0 %v431_v37  ;;  %384 = vmatpush1.bf16.msra.mxu1 %v431_v37 }
  0x23   :  { %264 = vmatprep.subr.bf16.mxu0 %v432_v41  ;;  %377 = vmatprep.subr.bf16.mxu1 %v432_v41 }
  0x24   :  { %87 = vperm.xlu1 %412, %v78_v30   ;;  %90 = vperm.xlu0 %411, %v79_v31  }
  0x26   :  { %265 = vmatpush1.bf16.msra.mxu0 %v434_v42  ;;  %385 = vmatpush1.bf16.msra.mxu1 %v434_v42 }
  0x27   :  { %266 = vmatprep.subr.bf16.mxu0 %v435_v46  ;;  %378 = vmatprep.subr.bf16.mxu1 %v435_v46 }
  0x28   :  { %413 = vset.pattern.permute.xlu1 %v490_v38  ;;  %414 = vset.pattern.permute.xlu0 %v490_v38 }
  0x29   :  { %105 = vperm.xlu1 %413, %v100_v34   ;;  %108 = vperm.xlu0 %414, %v101_v35  }
  0x2a   :  { %267 = vmatpush1.bf16.msra.mxu0 %v437_v47  ;;  %386 = vmatpush1.bf16.msra.mxu1 %v437_v47 }
  0x2b   :  { %268 = vmatprep.subr.bf16.mxu0 %v438_v49  ;;  %379 = vmatprep.subr.bf16.mxu1 %v438_v49 }
  0x2d   :  { %111 = vperm.xlu1 %413, %v102_v39   ;;  %415 = vset.pattern.permute.xlu0 %v491_v43 }
  0x2e   :  { %129 = vperm.xlu0 %415, %v124_v40   ;;  %269 = vmatpush1.bf16.msra.mxu0 %v440_v50 }
  0x2f   :  { %387 = vmatpush1.bf16.msra.mxu1 %v440_v50 }
  0x31   :  { %114 = vperm.xlu1 %413, %v103_v44  }
  0x32   :  { %138 = vperm.xlu0 %415, %v127_v45  }
  0x35   :  { %416 = vset.pattern.permute.xlu1 %v491_v43 }
  0x36   :  { %132 = vperm.xlu1 %416, %v125_v48  }
  0x3a   :  { %135 = vperm.xlu1 %416, %v126_v51  }
  0x92   :  { %v64_v52 = vpop.permute.xlu1 %63  ;;  %v58_v53 = vpop.permute.xlu0 %57 }
  0x93   :  { %vm68_vm1 = vcmp.eq.s32.totalorder %v54_v61, %v58_v53  ;;  %vm70_vm3 = vcmp.eq.s32.totalorder %v54_v61, %v64_v52 }
  0x94   :  { %vm72_vm7 = vmor %vm55_vm2, %vm68_vm1 }
  0x95   :  { %vm540_vm9 = vmor %vm55_vm2, %vm70_vm3 }
  0x96   :  { %v67_v54 = vpop.permute.xlu1 %66  ;;  %v61_v55 = vpop.permute.xlu0 %60  ;;  %v555_v3 = vsel %vm540_vm9, 4294967295, %v554_v3 }
  0x97   :  { %vm69_vm0 = vcmp.eq.s32.totalorder %v54_v61, %v61_v55  ;;  %vm71_vm4 = vcmp.eq.s32.totalorder %v54_v61, %v67_v54 }
  0x98   :  { %vm73_vm5 = vmor %vm55_vm2, %vm69_vm0 }
  0x99   :  { %vm75_vm10 = vmor %vm55_vm2, %vm71_vm4 }
  0x9b   :  { %v85_v56 = vpop.permute.xlu1 %84  ;;  %v82_v57 = vpop.permute.xlu0 %81 }
  0x9c   :  { %vm93_vm6 = vcmp.eq.s32.totalorder %v54_v61, %v85_v56  ;;  %vm92_vm8 = vcmp.eq.s32.totalorder %v54_v61, %v82_v57 }
  0x9d   :  { %vm97_vm12 = vmor %vm73_vm5, %vm93_vm6 }
  0x9e   :  { %vm96_vm14 = vmor %vm72_vm7, %vm92_vm8 }
  0x9f   :  { %v88_v58 = vpop.permute.xlu1 %87  ;;  %v91_v59 = vpop.permute.xlu0 %90 }
  0xa0   :  { %vm95_vm11 = vcmp.eq.s32.totalorder %v54_v61, %v91_v59  ;;  %vm94_vm4 = vcmp.eq.s32.totalorder %v54_v61, %v88_v58 }
  0xa1   :  { %vm99_vm0 = vmor %vm75_vm10, %vm95_vm11 }
  0xa4   :  { %v106_v62 = vpop.permute.xlu1 %105  ;;  %v109_v63 = vpop.permute.xlu0 %108 }
  0xa5   :  { %vm116_vm13 = vcmp.eq.s32.totalorder %v54_v61, %v106_v62  ;;  %vm117_vm15 = vcmp.eq.s32.totalorder %v54_v61, %v109_v63 }
  0xa6   :  { %vm120_vm3 = vmor %vm96_vm14, %vm116_vm13  ;;  %vm556_vm13 = vnez %v555_v3 }
  0xa7   :  { %vm121_vm2 = vmor %vm97_vm12, %vm117_vm15 }
  0xa8   :  { %v112_v1 = vpop.permute.xlu1 %111  ;;  %vm98_vm14 = vmor %vm556_vm13, %vm94_vm4 }
  0xa9   :  { %v130_v2 = vpop.permute.xlu0 %129  ;;  %vm118_vm10 = vcmp.eq.s32.totalorder %v54_v61, %v112_v1 }
  0xaa   :  { %vm140_vm1 = vcmp.eq.s32.totalorder %v54_v61, %v130_v2  ;;  %vm122_vm15 = vmor %vm98_vm14, %vm118_vm10 }
  0xab   :  { %vm144_vm5 = vmor %vm120_vm3, %vm140_vm1 }
  0xac   :  { %v115_v4 = vpop.permute.xlu1 %114  ;;  %v352_v8 = vsel %vm144_vm5, 1.0, %v492_v7 }
  0xad   :  { %vm119_vm9 = vcmp.eq.s32.totalorder %v54_v61, %v115_v4  ;;  %v139_v5 = vpop.permute.xlu0 %138 }
  0xae   :  { %vm123_vm6 = vmor %vm99_vm0, %vm119_vm9  ;;  %vm143_vm7 = vcmp.eq.s32.totalorder %v54_v61, %v139_v5 }
  0xaf   :  { %vm147_vm12 = vmor %vm123_vm6, %vm143_vm7 }
  0xb0   :  { %v355_v12 = vsel %vm147_vm12, 1.0, %v492_v7 }
  0xb1   :  { %v133_v6 = vpop.permute.xlu1 %132 }
  0xb2   :  { %vm141_vm8 = vcmp.eq.s32.totalorder %v54_v61, %v133_v6 }
  0xb3   :  { %vm145_vm11 = vmor %vm121_vm2, %vm141_vm8 }
  0xb4   :  { %v353_v9 = vsel %vm145_vm11, 1.0, %v492_v7 }
  0xb5   :  { %v156_v10 = vpack.c.bf16 %v353_v9, %v352_v8  ;;  %v136_v11 = vpop.permute.xlu1 %135 }
  0xb6   :  { %vm142_vm1 = vcmp.eq.s32.totalorder %v54_v61, %v136_v11 }
  0xb7   :  { %vm146_vm3 = vmor %vm122_vm15, %vm142_vm1  ;;  %287 = vmatmul.mubr.bf16.vlgmr.msra.gmra.mxu0 %v156_v10 }
  0xb8   :  { %v354_v13 = vsel %vm146_vm3, 1.0, %v492_v7 }
  0xb9   :  { %v157_v14 = vpack.c.bf16 %v355_v12, %v354_v13 }
  0xbb   :  { %297 = vmatmul.mubr.bf16.vlgmr.msra.gmra.mxu1 %v157_v14 }
 0x177   :  { %v288_v15 = vpop.f32.mrf.mxu0 }
 0x178   :  { %vm307_vm0 = vcmp.gt.f32.partialorder %v288_v15, 0.0 }
 0x179   :  { %v290_v16 = vpop.f32.mrf.mxu0 }
 0x17a   :  { %vm308_vm4 = vcmp.gt.f32.partialorder %v290_v16, 0.0 }
 0x17b   :  { %v292_v17 = vpop.f32.mrf.mxu0  ;;  %v298_v18 = vpop.f32.mrf.mxu1 }
 0x17c   :  { %vm309_vm9 = vcmp.gt.f32.partialorder %v292_v17, 0.0  ;;  %vm311_vm6 = vcmp.gt.f32.partialorder %v298_v18, 0.0 }
 0x17d   :  { %v294_v19 = vpop.f32.mrf.mxu0  ;;  %v300_v20 = vpop.f32.mrf.mxu1  ;;  %vm315_vm5 = vmpackc.low %vm309_vm9, %vm307_vm0 }
 0x17e   :  { %vm310_vm2 = vcmp.gt.f32.partialorder %v294_v19, 0.0  ;;  %vm312_vm11 = vcmp.gt.f32.partialorder %v300_v20, 0.0 }
 0x17f   :  { %v302_v21 = vpop.f32.mrf.mxu1  ;;  %vm318_vm7 = vmpackc.low %vm310_vm2, %vm308_vm4 }
 0x180   :  { %vm313_vm8 = vcmp.gt.f32.partialorder %v302_v21, 0.0 }
 0x181   :  { %vm316_vm10 = vmpackc.low %vm313_vm8, %vm311_vm6  ;;  %v304_v22 = vpop.f32.mrf.mxu1 }
 0x182   :  { %vm317_vm13 = vmpackc.even %vm316_vm10, %vm315_vm5  ;;  %vm314_vm14 = vcmp.gt.f32.partialorder %v304_v22, 0.0 }
 0x183   :  { %v321_v23 = vsel %vm317_vm13, 16843009, %v488_v0  ;;  %vm319_vm12 = vmpackc.low %vm314_vm14, %vm312_vm11 }
 0x184   :  { %323 = vst [vmem:[#allocation5] sm:$0xff] %v321_v23  ;;  %vm320_vm15 = vmpackc.even %vm319_vm12, %vm318_vm7 }
 0x185   :  { %v322_v24 = vsel %vm320_vm15, 16843009, %v488_v0 }
 0x186   :  { %324 = vst [vmem:[#allocation5 + $0x8] sm:$0xff] %v322_v24 }
 0x187   :  { %472 = shalt.err (!%p469_p9)
}
 0x188   :  { %334 = dma.vmem_to_hbm [thread:$0]  %s332_s23, 256, %s553_s2, [#allocation4]  }
 0x189   :  { %483 = dma.done.wait [#allocation4], 256  }
 0x18a   :  { %484 = vsyncadd [#allocation4], 4294967040 }
 0x18b   :  { %338 = vsyncpa [#allocation3], 1 }
 0x18c   :  { %339 = vsyncpa [#allocation4], 1 }

</bundles_post_ra>
